<compile_context>
chip_gen: v6e
topology: v6e:2x2x1
jax: 0.10.0
libtpu: 0.0.40
codegen_flags: <defaults>
</compile_context>

<pallas_src>
import jax
import jax.numpy as jnp
from jax.experimental import pallas as pl
from jax.experimental.pallas import tpu as pltpu

LANE = 128  # padded feature width inside the kernel (one full vreg lane row)


def _round_up(n, m):
    return ((n + m - 1) // m) * m


# --------------------------------------------------------------------------
# Weight packing: one VMEM-resident slab holding every layer's W and b.
# --------------------------------------------------------------------------
def build_weight_slab(params, n_features):
    """params: list of (W (in, out), b (out,)) f32, all out-widths <= LANE.

    Returns (slab, w_offs, b_offs, k_dims).  Layer i's weight lives at rows
    [w_offs[i], w_offs[i] + k_dims[i]) (zero-padded to 128 columns); its bias
    lives at row b_offs[i].  The LAST layer's bias padding is -1e30 so that the
    padded classes get softmax probability exactly 0.
    """
    n_layers = len(params)
    w_offs, b_offs, k_dims = [], [], []
    off = 0
    for i, (W, _) in enumerate(params):
        # Layer 0 contracts over the true n_features; later layers contract
        # over the full 128-lane padded hidden width (extra rows are zero).
        k = W.shape[0] if i == 0 else LANE
        k_dims.append(k)
        w_offs.append(off)
        off += _round_up(k, 8)
    for _ in range(n_layers):
        b_offs.append(off)
        off += 8  # keep every bias row sublane-aligned
    total_rows = _round_up(off, 8)

    slab = jnp.zeros((total_rows, LANE), jnp.float32)
    for i, (W, b) in enumerate(params):
        kin, kout = W.shape
        slab = slab.at[w_offs[i]:w_offs[i] + kin, :kout].set(W.astype(jnp.float32))
        if i == n_layers - 1:
            brow = jnp.full((LANE,), -1e30, jnp.float32)  # mask padded classes
        else:
            brow = jnp.zeros((LANE,), jnp.float32)
        brow = brow.at[:kout].set(b.reshape(-1).astype(jnp.float32))
        slab = slab.at[b_offs[i], :].set(brow)
    return slab, tuple(w_offs), tuple(b_offs), tuple(k_dims)


# --------------------------------------------------------------------------
# Kernel
# --------------------------------------------------------------------------
def make_mlp_kernel(n_layers, w_offs, b_offs, k_dims, act_fn):
    def kernel(x_ref, slab_ref, o_ref):
        h = x_ref[...]  # (bb, n_features) f32
        for i in range(n_layers):  # static unroll
            w = slab_ref[w_offs[i]:w_offs[i] + k_dims[i], :]   # (K, 128), static slice
            b = slab_ref[b_offs[i]:b_offs[i] + 1, :]           # (1, 128)
            h = jnp.dot(h, w, preferred_element_type=jnp.float32) + b
            if i != n_layers - 1:
                h = act_fn(h)
        # softmax over dim=1 (lane axis); padded classes have logit -1e30 -> prob 0.
        m = jnp.max(h, axis=1, keepdims=True)
        e = jnp.exp(h - m)
        denom = jnp.sum(e, axis=1, keepdims=True)
        o_ref[...] = e / denom  # exact divide: rows sum to 1
    return kernel


# --------------------------------------------------------------------------
# Wrapper
# --------------------------------------------------------------------------
def mlp_forward(x, params, activation="relu", block_b=4096, min_grid_steps=2):
    """x: (B, n_features) f32.  params: list of (W (in,out), b (out,)).

    Returns (B, out_dim) f32 softmax probabilities.
    """
    B, n_features = x.shape
    out_dim = params[-1][0].shape[1]
    n_layers = len(params)
    assert all(W.shape[1] <= LANE for W, _ in params), "layer widths must be <= 128"

    act_fn = {
        "relu": lambda v: jnp.maximum(v, 0.0),
        "sigmoid": jax.nn.sigmoid,
        "tanh": jnp.tanh,
    }[activation]

    slab, w_offs, b_offs, k_dims = build_weight_slab(params, n_features)

    # Batch tile: as large as block_b allows, multiple of 8 sublanes, but keep
    # >= min_grid_steps grid steps so v7x's two TensorCores both get work.
    B8 = _round_up(B, 8)
    bb = min(block_b, max(8, _round_up(pl.cdiv(B8, min_grid_steps), 8)))
    Bp = _round_up(B8, bb)
    grid = (Bp // bb,)

    x_pad = x if Bp == B else jnp.pad(x, ((0, Bp - B), (0, 0)))

    kernel = make_mlp_kernel(n_layers, w_offs, b_offs, k_dims, act_fn)

    out = pl.pallas_call(
        kernel,
        out_shape=jax.ShapeDtypeStruct((Bp, LANE), jnp.float32),
        grid=grid,
        in_specs=[
            pl.BlockSpec((bb, n_features), lambda i: (i, 0)),   # batch tile
            pl.BlockSpec(slab.shape, lambda i: (0, 0)),         # resident weight slab
        ],
        out_specs=pl.BlockSpec((bb, LANE), lambda i: (i, 0)),   # lane-dense writeback
        compiler_params=pltpu.CompilerParams(
            dimension_semantics=("parallel",),          # v7x: shard batch over 2 TCs
            vmem_limit_bytes=32 * 1024 * 1024,          # explicit, with headroom
        ),
    )(x_pad, slab)

    return out[:B, :out_dim]


# --------------------------------------------------------------------------
# Init / reference
# --------------------------------------------------------------------------
def init_params(key, n_features, hidden_neurons):
    """Matches PyTorch nn.Linear shapes/init; W stored transposed as (in, out)."""
    layer_neurons = [n_features, *hidden_neurons]
    params = []
    for idx in range(len(layer_neurons) - 1):
        fan_in, fan_out = layer_neurons[idx], layer_neurons[idx + 1]
        key, kw, kb = jax.random.split(key, 3)
        bound = 1.0 / jnp.sqrt(fan_in)
        W = jax.random.uniform(kw, (fan_in, fan_out), jnp.float32, -bound, bound)
        b = jax.random.uniform(kb, (fan_out,), jnp.float32, -bound, bound)
        params.append((W, b))
    return params


def mlp_reference(x, params, activation="relu"):
    act_fn = {
        "relu": lambda v: jnp.maximum(v, 0.0),
        "sigmoid": jax.nn.sigmoid,
        "tanh": jnp.tanh,
    }[activation]
    h = x
    for i, (W, b) in enumerate(params):
        h = h @ W + b
        if i != len(params) - 1:
            h = act_fn(h)
    return jax.nn.softmax(h, axis=1)


if __name__ == "__main__":
    # MLP(n_features=16), default hidden_neurons=[2,4,4,2], activation='relu',
    # dropout=False, batch_norm=False (eval-mode semantics).
    n_features = 16
    hidden_neurons = [2, 4, 4, 2]
    batch = 256  # exercises the batch grid: 2 tiles of 128 rows

    key = jax.random.PRNGKey(0)
    key, kx = jax.random.split(key)
    x = jax.random.normal(kx, (batch, n_features), jnp.float32)

    params = init_params(key, n_features, hidden_neurons)

    y = mlp_forward(x, params, activation="relu")
    y = jax.block_until_ready(y)

    y_ref = mlp_reference(x, params, activation="relu")
    assert y.shape == (batch, hidden_neurons[-1]), "bad output shape"
    assert jnp.allclose(y, y_ref, atol=1e-5, rtol=1e-5), "mismatch vs JAX reference"
    assert jnp.allclose(jnp.sum(y, axis=1), 1.0, atol=1e-5), "softmax rows must sum to 1"

    print("KERNEL_OK")
</pallas_src>

<mosaic_0001>
module attributes {stable_mosaic.version = 11 : i64} {
  func.func @kernel(%arg0: i32, %arg1: memref<128x16xf32, #tpu.memory_space<vmem>>, %arg2: memref<432x128xf32, #tpu.memory_space<vmem>>, %arg3: memref<128x128xf32, #tpu.memory_space<vmem>>) attributes {dimension_semantics = [#tpu.dimension_semantics<parallel>], iteration_bounds = array<i64: 2>, scalar_prefetch = 0 : i64, scratch_operands = 0 : i64, tpu.core_type = #tpu.core_type<tc>, window_params = [{transform_indices = @transform_0, window_bounds = array<i64: 128, 16>}, {pipeline_mode = #tpu.pipeline_mode<synchronous>, transform_indices = @transform_1, window_bounds = array<i64: 432, 128>}, {transform_indices = @transform_2, window_bounds = array<i64: 128, 128>}]} {
    %c0 = arith.constant 0 : index
    %c0_0 = arith.constant 0 : index
    %0 = vector.load %arg1[%c0, %c0_0] : memref<128x16xf32, #tpu.memory_space<vmem>>, vector<128x16xf32>
    %c0_1 = arith.constant 0 : index
    %c0_2 = arith.constant 0 : index
    %1 = vector.load %arg2[%c0_1, %c0_2] : memref<432x128xf32, #tpu.memory_space<vmem>>, vector<16x128xf32>
    %c400 = arith.constant 400 : index
    %c0_3 = arith.constant 0 : index
    %2 = vector.load %arg2[%c400, %c0_3] : memref<432x128xf32, #tpu.memory_space<vmem>>, vector<1x128xf32>
    %cst = arith.constant dense<0.000000e+00> : vector<128x128xf32>
    %3 = tpu.matmul %0, %1, %cst {dimension_numbers = #tpu.dot_dimension_numbers<[1], [0], [0], [1], [0, 0, 1, 1], [], []>} : vector<128x16xf32>, vector<16x128xf32>, vector<128x128xf32> -> vector<128x128xf32>
    %4 = vector.broadcast %2 : vector<1x128xf32> to vector<128x128xf32>
    %5 = arith.addf %3, %4 : vector<128x128xf32>
    %cst_4 = arith.constant 0.000000e+00 : f32
    %6 = vector.broadcast %cst_4 : f32 to vector<128x128xf32>
    %7 = arith.maximumf %5, %6 : vector<128x128xf32>
    %c16 = arith.constant 16 : index
    %c0_5 = arith.constant 0 : index
    %8 = vector.load %arg2[%c16, %c0_5] : memref<432x128xf32, #tpu.memory_space<vmem>>, vector<128x128xf32>
    %c408 = arith.constant 408 : index
    %c0_6 = arith.constant 0 : index
    %9 = vector.load %arg2[%c408, %c0_6] : memref<432x128xf32, #tpu.memory_space<vmem>>, vector<1x128xf32>
    %cst_7 = arith.constant dense<0.000000e+00> : vector<128x128xf32>
    %10 = tpu.matmul %7, %8, %cst_7 {dimension_numbers = #tpu.dot_dimension_numbers<[1], [0], [0], [1], [0, 0, 1, 1], [], []>} : vector<128x128xf32>, vector<128x128xf32>, vector<128x128xf32> -> vector<128x128xf32>
    %11 = vector.broadcast %9 : vector<1x128xf32> to vector<128x128xf32>
    %12 = arith.addf %10, %11 : vector<128x128xf32>
    %cst_8 = arith.constant 0.000000e+00 : f32
    %13 = vector.broadcast %cst_8 : f32 to vector<128x128xf32>
    %14 = arith.maximumf %12, %13 : vector<128x128xf32>
    %c144 = arith.constant 144 : index
    %c0_9 = arith.constant 0 : index
    %15 = vector.load %arg2[%c144, %c0_9] : memref<432x128xf32, #tpu.memory_space<vmem>>, vector<128x128xf32>
    %c416 = arith.constant 416 : index
    %c0_10 = arith.constant 0 : index
    %16 = vector.load %arg2[%c416, %c0_10] : memref<432x128xf32, #tpu.memory_space<vmem>>, vector<1x128xf32>
    %cst_11 = arith.constant dense<0.000000e+00> : vector<128x128xf32>
    %17 = tpu.matmul %14, %15, %cst_11 {dimension_numbers = #tpu.dot_dimension_numbers<[1], [0], [0], [1], [0, 0, 1, 1], [], []>} : vector<128x128xf32>, vector<128x128xf32>, vector<128x128xf32> -> vector<128x128xf32>
    %18 = vector.broadcast %16 : vector<1x128xf32> to vector<128x128xf32>
    %19 = arith.addf %17, %18 : vector<128x128xf32>
    %cst_12 = arith.constant 0.000000e+00 : f32
    %20 = vector.broadcast %cst_12 : f32 to vector<128x128xf32>
    %21 = arith.maximumf %19, %20 : vector<128x128xf32>
    %c272 = arith.constant 272 : index
    %c0_13 = arith.constant 0 : index
    %22 = vector.load %arg2[%c272, %c0_13] : memref<432x128xf32, #tpu.memory_space<vmem>>, vector<128x128xf32>
    %c424 = arith.constant 424 : index
    %c0_14 = arith.constant 0 : index
    %23 = vector.load %arg2[%c424, %c0_14] : memref<432x128xf32, #tpu.memory_space<vmem>>, vector<1x128xf32>
    %cst_15 = arith.constant dense<0.000000e+00> : vector<128x128xf32>
    %24 = tpu.matmul %21, %22, %cst_15 {dimension_numbers = #tpu.dot_dimension_numbers<[1], [0], [0], [1], [0, 0, 1, 1], [], []>} : vector<128x128xf32>, vector<128x128xf32>, vector<128x128xf32> -> vector<128x128xf32>
    %25 = vector.broadcast %23 : vector<1x128xf32> to vector<128x128xf32>
    %26 = arith.addf %24, %25 : vector<128x128xf32>
    %cst_16 = arith.constant dense<0xFF800000> : vector<128xf32>
    %27 = vector.multi_reduction <maximumf>, %26, %cst_16 [1] : vector<128x128xf32> to vector<128xf32>
    %28 = vector.shape_cast %27 : vector<128xf32> to vector<128x1xf32>
    %29 = vector.broadcast %28 : vector<128x1xf32> to vector<128x128xf32>
    %30 = arith.subf %26, %29 : vector<128x128xf32>
    %31 = math.exp %30 : vector<128x128xf32>
    %cst_17 = arith.constant dense<0.000000e+00> : vector<128xf32>
    %32 = vector.multi_reduction <add>, %31, %cst_17 [1] : vector<128x128xf32> to vector<128xf32>
    %33 = vector.shape_cast %32 : vector<128xf32> to vector<128x1xf32>
    %34 = vector.broadcast %33 : vector<128x1xf32> to vector<128x128xf32>
    %35 = arith.divf %31, %34 : vector<128x128xf32>
    %c0_18 = arith.constant 0 : index
    %c0_19 = arith.constant 0 : index
    %36 = vector.load %arg3[%c0_18, %c0_19] : memref<128x128xf32, #tpu.memory_space<vmem>>, vector<128x128xf32>
    tpu.vector_store %arg3[%c0_18, %c0_19], %35 {strides = array<i32>} : memref<128x128xf32, #tpu.memory_space<vmem>>, vector<128x128xf32>,
    return
  }
  func.func @transform_0(%arg0: i32) -> (i32, i32) {
    %c0_i32 = arith.constant 0 : i32
    %c0_i32_0 = arith.constant 0 : i32
    return %arg0, %c0_i32 : i32, i32
  }
  func.func @transform_1(%arg0: i32) -> (i32, i32) {
    %c0_i32 = arith.constant 0 : i32
    %c0_i32_0 = arith.constant 0 : i32
    %c0_i32_1 = arith.constant 0 : i32
    return %c0_i32, %c0_i32_0 : i32, i32
  }
  func.func @transform_2(%arg0: i32) -> (i32, i32) {
    %c0_i32 = arith.constant 0 : i32
    %c0_i32_0 = arith.constant 0 : i32
    return %arg0, %c0_i32 : i32, i32
  }
}

</mosaic_0001>

<bundles_post_ra>
// kernel: tpu_custom_call.1
= control target key start
LH: loop header
LB: loop body
LE: loop exit
PB: predicated region body
PF: predicated region fallthrough
CT: control target
= control target key end

     0   :  { %7 = vsyncpa [#allocation3], 0  ;;  %s2121_s0 = inlined_call_operand.vmem [shape: f32[256,16], index: 0, kind: input, shape index: {}]   ;;  %s2122_s1 = inlined_call_operand.hbm [shape: f32[432,128], index: 1, kind: input, shape index: {}]   ;;  %s2123_s2 = inlined_call_operand.hbm [shape: f32[256,128], index: 2, kind: output, shape index: {}]  }
   0x1   :  { %8 = vsyncpa [#allocation4], 0 }
   0x2   :  { %10 = vsyncpa [#allocation4 + $0x1], 0  ;;  %s1779_s9 = smov 0   ;;  %s1781_s10 = smov 0  }
   0x3   :  { %s1783_s11 = smov 0   ;;  %s1785_s12 = smov 0  }
   0x4 LB: > { %s1800_s13 = sadd.s32 4294967295, %s1756_s12   ;;  %s1171_s14 = sadd.s32 4294967294, %s1756_s12   ;;  %s1756_s12 = sphi %s1785_s12, %s2131_s12   ;;  %s1752_s11 = sphi %s1783_s11, %s2130_s11   ;;  %s1748_s10 = sphi %s1781_s10, %s2129_s10   ;;  %s1744_s9 = sphi %s1779_s9, %s2128_s9  }
   0x5   : > { %s1804_s15 = sadd.s32 1, %s1756_s12   ;;  %s70_s16 = sadd.s32 1, %s1752_s11 }
   0x6   : > { %s67_s17 = ssub.s32 %s1756_s12, %s1804_s15  ;;  %p80_p0 = scmp.ne.s32.totalorder %s1752_s11, %s1748_s10 }
   0x7   : > { %p68_p1 = scmp.eq.s32.totalorder %s67_s17, 0  ;;  %p81_p2 = scmp.eq.s32.totalorder %s1800_s13, 1 }
   0x8   : > { %p86_p3 = scmp.ne.s32.totalorder %s1748_s10, %s1744_s9  ;;  %p87_p4 = scmp.eq.s32.totalorder %s1171_s14, 1 }
   0x9   : > { %s1815_s18 = scalar_select %p68_p1, %s1752_s11, %s70_s16  }
   0xa   : > { %p1817_p5 = por %p81_p2, %p80_p0  ;;  %p1821_p6 = por %p87_p4, %p86_p3 }
   0xb   : > { %p1172_p7 = scmp.ge.s32.totalorder %s1756_s12, 1  ;;  %p94_p8 = scmp.lt.s32.totalorder %s1756_s12, 3 }
   0xc   : > { %s2125_s20 = scalar_select %p1821_p6, 1, 0 }
   0xd   : > { %p1562_p9 = scmp.eq.s32.totalorder %s1800_s13, 0  ;;  %p1828_p10 = pnand %p1172_p7, %p94_p8 }
   0xe   : > { %s1758_s22 = smov [#allocation2]  }
   0xf   : > { %s106_s23 = sshll.u32 %s1758_s22, 4  ;;  %p1554_p11 = pneg %p1828_p10  ;;  %s107_s23 = int_to_ptr.vmem [resolvable:$true] %s106_s23 }
  0x10   : > { %s1677_s24 = scalar_lea.vmem %s107_s23, 6912  ;;  %p1685_p3 = scmp.lt.s32.totalorder %s107_s23, %s107_s23 }
  0x11   : > { %p1555_p12 = pnand %p1562_p9, %p1554_p11  ;;  %p1678_p0 = scmp.ne.s32.totalorder %s107_s23, %s1677_s24 }
  0x12   : > { %p1686_p4 = scmp.lt.s32.totalorder %s1677_s24, %s1677_s24 }
  0x13   : > { %p1668_p13 = pneg %p1555_p12 }
  0x14   : > { %p1687_p6 = por %p1686_p4, %p1685_p3 }
  0x15   : > { %p1680_p1 = pnand %p1678_p0, %p1668_p13 }
  0x17   : > { %p1681_p2 = pneg %p1680_p1 }
  0x19   : > { %p1688_p7 = pnand %p1687_p6, %p1681_p2 }
  0x1b   : > { %1691 = shalt.err (!%p1688_p7)
}
  0x1c   : > { %s1759_s25 = smov 128   ;;  %s1760_s26 = smov 8  }
  0x1d   : > { %1557 = dma.hbm_to_vmem [thread:$0]  (!%p1555_p12), %s2122_s1, 6912, %s107_s23, [#allocation3], %s1759_s25, %s1759_s25, %s1760_s26  }
  0x1e   : > { %131 = sbr.rel (%p1828_p10) target bundleno = 1196 (0x4ac), region = 28 }
  0x23   : > { %1735 = dma.done.wait (%p1562_p9), [#allocation3], 6912  }
  0x24   : > { %1737 = vsyncadd (%p1562_p9), [#allocation3], 4294960384  ;;  %s1178_s29 = sshll.u32 %s1800_s13, 4  ;;  %vm183_vm0 = vcmask 130048   ;;  %v177_v0 = vld [vmem:[#allocation2 + $0x8] sm:$0xff]  ;;  %v176_v1 = vld [vmem:[#allocation2] sm:$0xff] }
  0x25   : > { %p154_p8 = scmp.lt.s32.totalorder %s1178_s29, 31  ;;  %1320 = vmatprep.subr.mxu0 %v177_v0  ;;  %v408_v6 = vld [vmem:[#allocation2 + $0x88] sm:$0xff]  ;;  %v407_v7 = vld [vmem:[#allocation2 + $0x80] sm:$0xff]  ;;  %v406_v9 = vld [vmem:[#allocation2 + $0x78] sm:$0xff]  ;;  %s150_s6 = sand.u32 1, %s1748_s10  }
  0x26   : > { %1321 = vmatpush3.msra.mxu0 %v177_v0  ;;  %1348 = vmatprep.subr.mxu1 %v408_v6  ;;  %v405_v11 = vld [vmem:[#allocation2 + $0x70] sm:$0xff]  ;;  %v404_v13 = vld [vmem:[#allocation2 + $0x68] sm:$0xff]  ;;  %v403_v15 = vld [vmem:[#allocation2 + $0x60] sm:$0xff]  ;;  %s1177_s7 = sshll.u32 %s150_s6, 7  ;;  %s1205_s14 = sshll.u32 %s1800_s13, 11 }
  0x27   : > { %s2133_s29 = smov (!%p154_p8, %s1178_s29), 31  ;;  %1322 = vmatprep.subr.mxu0 %v176_v1  ;;  %1349 = vmatpush3.msra.mxu1 %v408_v6  ;;  %v402_v17 = vld [vmem:[#allocation2 + $0x58] sm:$0xff]  ;;  %v401_v19 = vld [vmem:[#allocation2 + $0x50] sm:$0xff]  ;;  %v400_v21 = vld [vmem:[#allocation2 + $0x48] sm:$0xff]  ;;  %s2037_s8 = scalar_lea.vmem [#allocation5], %s1177_s7 }
  0x28   : > { %s1179_s30 = sshll.u32 %s2133_s29, 3  ;;  %1323 = vmatpush3.msra.mxu0 %v176_v1  ;;  %1350 = vmatprep.subr.mxu1 %v407_v7  ;;  %v399_v23 = vld [vmem:[#allocation2 + $0x40] sm:$0xff]  ;;  %v398_v25 = vld [vmem:[#allocation2 + $0x38] sm:$0xff]  ;;  %v397_v27 = vld [vmem:[#allocation2 + $0x30] sm:$0xff]  ;;  %s1097_s16 = sshll.u32 %s2037_s8, 4  ;;  %s2074_s16 = int_to_ptr.vmem [resolvable:$true] %s1097_s16 }
  0x29   : > { %s1849_s5 = scalar_lea.vmem %s2121_s0, %s1179_s30  ;;  %1351 = vmatpush3.msra.mxu1 %v407_v7  ;;  %v396_v30 = vld [vmem:[#allocation2 + $0x28] sm:$0xff]  ;;  %v395_v31 = vld [vmem:[#allocation2 + $0x20] sm:$0xff]  ;;  %v394_v32 = vld [vmem:[#allocation2 + $0x18] sm:$0xff]  ;;  %s2072_s22 = scalar_lea.hbm %s2123_s2, %s1205_s14 }
  0x2a   : > { %v160_v2 = vld [vmem:[%s1849_s5] sm:$0xff]  ;;  %v161_v3 = vld [vmem:[%s1849_s5 + $0x8] sm:$0xff]  ;;  %v162_v4 = vld [vmem:[%s1849_s5 + $0x10] sm:$0xff]  ;;  %1352 = vmatprep.subr.mxu1 %v406_v9  ;;  %s2081_s13 = scalar_lea.sflag [#allocation4], %s150_s6  ;;  %s1692_s23 = scalar_lea.vmem %s2074_s16, 2048 }
  0x2b   : > { %1324 = vmatprep.mubr.msk.f32.mxu0 %vm183_vm0, %v160_v2  ;;  %v163_v5 = vld [vmem:[%s1849_s5 + $0x18] sm:$0xff]  ;;  %v164_v8 = vld [vmem:[%s1849_s5 + $0x20] sm:$0xff]  ;;  %v165_v10 = vld [vmem:[%s1849_s5 + $0x28] sm:$0xff]  ;;  %1353 = vmatpush3.msra.mxu1 %v406_v9  ;;  %p1693_p6 = scmp.ne.s32.totalorder %s2074_s16, %s1692_s23  ;;  %s1761_s24 = smov [#allocation5]  }
  0x2c   : > { %1325 = vmatmul.mubr.msk.f32.vlgmr.msra.gmra.mxu0 %vm183_vm0, %v161_v3  ;;  %v166_v12 = vld [vmem:[%s1849_s5 + $0x30] sm:$0xff]  ;;  %1354 = vmatprep.subr.mxu1 %v405_v11  ;;  %v167_v14 = vld [vmem:[%s1849_s5 + $0x38] sm:$0xff]  ;;  %v168_v16 = vld [vmem:[%s1849_s5 + $0x40] sm:$0xff]  ;;  %s1696_s25 = sshll.u32 %s1761_s24, 4  ;;  %s1697_s25 = int_to_ptr.vmem [resolvable:$false] %s1696_s25 }
  0x2d   : > { %1327 = vmatprep.mubr.msk.f32.mxu0 %vm183_vm0, %v162_v4  ;;  %1355 = vmatpush3.msra.mxu1 %v405_v11  ;;  %v169_v18 = vld [vmem:[%s1849_s5 + $0x48] sm:$0xff]  ;;  %v170_v20 = vld [vmem:[%s1849_s5 + $0x50] sm:$0xff]  ;;  %v171_v22 = vld [vmem:[%s1849_s5 + $0x58] sm:$0xff]  ;;  %p1694_p9 = pnand %p1693_p6, %p1817_p5  ;;  %s1698_s26 = scalar_lea.vmem %s1697_s25, 4096 }
  0x2e   : > { %1356 = vmatprep.subr.mxu1 %v404_v13  ;;  %v172_v24 = vld [vmem:[%s1849_s5 + $0x60] sm:$0xff]  ;;  %v173_v26 = vld [vmem:[%s1849_s5 + $0x68] sm:$0xff]  ;;  %v174_v28 = vld [vmem:[%s1849_s5 + $0x70] sm:$0xff]  ;;  %p1699_p11 = scmp.lt.s32.totalorder %s2074_s16, %s1697_s25  ;;  %p1700_p12 = scmp.lt.s32.totalorder %s1698_s26, %s1692_s23 }
  0x2f   : > { %1357 = vmatpush3.msra.mxu1 %v404_v13  ;;  %v175_v29 = vld [vmem:[%s1849_s5 + $0x78] sm:$0xff]  ;;  %v393_v33 = vld [vmem:[#allocation2 + $0x10] sm:$0xff]  ;;  %v590_v34 = vld [vmem:[#allocation2 + $0x108] sm:$0xff]  ;;  %p1695_p10 = pneg %p1694_p9 }
  0x30   : > { %1328 = vmatmul.mubr.msk.f32.gmra.mxu0 %vm183_vm0, %v163_v5  ;;  %1358 = vmatprep.subr.mxu1 %v403_v15  ;;  %v589_v35 = vld [vmem:[#allocation2 + $0x100] sm:$0xff]  ;;  %v588_v36 = vld [vmem:[#allocation2 + $0xf8] sm:$0xff]  ;;  %v587_v37 = vld [vmem:[#allocation2 + $0xf0] sm:$0xff]  ;;  %p1701_p13 = por %p1700_p12, %p1699_p11 }
  0x31   : > { %1330 = vmatprep.mubr.msk.f32.mxu0 %vm183_vm0, %v164_v8  ;;  %1359 = vmatpush3.msra.mxu1 %v403_v15  ;;  %v586_v38 = vld [vmem:[#allocation2 + $0xe8] sm:$0xff]  ;;  %v585_v39 = vld [vmem:[#allocation2 + $0xe0] sm:$0xff]  ;;  %v584_v40 = vld [vmem:[#allocation2 + $0xd8] sm:$0xff] }
  0x32   : > { %1360 = vmatprep.subr.mxu1 %v402_v17  ;;  %1404 = vmatprep.subr.mxu0 %v590_v34  ;;  %v583_v41 = vld [vmem:[#allocation2 + $0xd0] sm:$0xff]  ;;  %v582_v42 = vld [vmem:[#allocation2 + $0xc8] sm:$0xff]  ;;  %v581_v43 = vld [vmem:[#allocation2 + $0xc0] sm:$0xff]  ;;  %p1702_p0 = pnand %p1701_p13, %p1695_p10 }
  0x33   : > { %1361 = vmatpush3.msra.mxu1 %v402_v17  ;;  %1405 = vmatpush3.msra.mxu0 %v590_v34  ;;  %v580_v44 = vld [vmem:[#allocation2 + $0xb8] sm:$0xff]  ;;  %v579_v45 = vld [vmem:[#allocation2 + $0xb0] sm:$0xff]  ;;  %v578_v46 = vld [vmem:[#allocation2 + $0xa8] sm:$0xff] }
  0x34   : > { %1331 = vmatmul.mubr.msk.f32.gmra.mxu0 %vm183_vm0, %v165_v10  ;;  %1362 = vmatprep.subr.mxu1 %v401_v19  ;;  %v1180_v47 = vld [vmem:[#allocation2 + $0x190] ss:$0 sm:$0xff] }
  0x35   : > { %1333 = vmatprep.mubr.msk.f32.mxu0 %vm183_vm0, %v166_v12  ;;  %1363 = vmatpush3.msra.mxu1 %v401_v19  ;;  %v575_v34 = vld [vmem:[#allocation2 + $0x90] sm:$0xff] }
  0x36   : > { %1364 = vmatprep.subr.mxu1 %v400_v21  ;;  %1406 = vmatprep.subr.mxu0 %v589_v35 }
  0x37   : > { %1365 = vmatpush3.msra.mxu1 %v400_v21  ;;  %1407 = vmatpush3.msra.mxu0 %v589_v35  ;;  %v772_v35 = vld [vmem:[#allocation2 + $0x188] sm:$0xff] }
  0x38   : > { %1334 = vmatmul.mubr.msk.f32.gmra.mxu0 %vm183_vm0, %v167_v14  ;;  %1366 = vmatprep.subr.mxu1 %v399_v23 }
  0x39   : > { %1336 = vmatprep.mubr.msk.f32.mxu0 %vm183_vm0, %v168_v16  ;;  %1367 = vmatpush3.msra.mxu1 %v399_v23 }
  0x3a   : > { %1368 = vmatprep.subr.mxu1 %v398_v25  ;;  %1408 = vmatprep.subr.mxu0 %v588_v36 }
  0x3b   : > { %1369 = vmatpush3.msra.mxu1 %v398_v25  ;;  %1409 = vmatpush3.msra.mxu0 %v588_v36  ;;  %v771_v36 = vld [vmem:[#allocation2 + $0x180] sm:$0xff] }
  0x3c   : > { %1337 = vmatmul.mubr.msk.f32.gmra.mxu0 %vm183_vm0, %v169_v18  ;;  %1370 = vmatprep.subr.mxu1 %v397_v27 }
  0x3d   : > { %1339 = vmatprep.mubr.msk.f32.mxu0 %vm183_vm0, %v170_v20  ;;  %1371 = vmatpush3.msra.mxu1 %v397_v27 }
  0x3e   : > { %1372 = vmatprep.subr.mxu1 %v396_v30  ;;  %1410 = vmatprep.subr.mxu0 %v587_v37 }
  0x3f   : > { %1373 = vmatpush3.msra.mxu1 %v396_v30  ;;  %1411 = vmatpush3.msra.mxu0 %v587_v37  ;;  %v770_v37 = vld [vmem:[#allocation2 + $0x178] sm:$0xff] }
  0x40   : > { %1340 = vmatmul.mubr.msk.f32.gmra.mxu0 %vm183_vm0, %v171_v22  ;;  %1374 = vmatprep.subr.mxu1 %v395_v31 }
  0x41   : > { %1342 = vmatprep.mubr.msk.f32.mxu0 %vm183_vm0, %v172_v24  ;;  %1375 = vmatpush3.msra.mxu1 %v395_v31 }
  0x42   : > { %1376 = vmatprep.subr.mxu1 %v394_v32  ;;  %1412 = vmatprep.subr.mxu0 %v586_v38 }
  0x43   : > { %1377 = vmatpush3.msra.mxu1 %v394_v32  ;;  %1413 = vmatpush3.msra.mxu0 %v586_v38  ;;  %v577_v32 = vld [vmem:[#allocation2 + $0xa0] sm:$0xff]  ;;  %v1883_v38 = vld [vmem:[#allocation2 + $0x170] sm:$0xff] }
  0x44   : > { %1343 = vmatmul.mubr.msk.f32.gmra.mxu0 %vm183_vm0, %v173_v26  ;;  %1378 = vmatprep.subr.mxu1 %v393_v33 }
  0x45   : > { %1345 = vmatprep.mubr.msk.f32.mxu0 %vm183_vm0, %v174_v28  ;;  %1379 = vmatpush3.msra.mxu1 %v393_v33  ;;  %v576_v33 = vld [vmem:[#allocation2 + $0x98] sm:$0xff] }
  0x46   : > { %1414 = vmatprep.subr.mxu0 %v585_v39  ;;  %1516 = vmatprep.subr.mxu1 %v772_v35 }
  0x47   : > { %1415 = vmatpush3.msra.mxu0 %v585_v39  ;;  %v1886_v39 = vld [vmem:[#allocation2 + $0x168] sm:$0xff] }
  0x48   : > { %1346 = vmatmul.mubr.msk.f32.gmra.mxu0 %vm183_vm0, %v175_v29  ;;  %1416 = vmatprep.subr.mxu0 %v584_v40 }
  0x49   : > { %1417 = vmatpush3.msra.mxu0 %v584_v40  ;;  %v1890_v40 = vld [vmem:[#allocation2 + $0x160] sm:$0xff] }
  0x4a   : > { %1418 = vmatprep.subr.mxu0 %v583_v41 }
  0x4b   : > { %1419 = vmatpush3.msra.mxu0 %v583_v41  ;;  %v1894_v41 = vld [vmem:[#allocation2 + $0x158] sm:$0xff] }
  0x4c   : > { %1420 = vmatprep.subr.mxu0 %v582_v42 }
  0x4d   : > { %1421 = vmatpush3.msra.mxu0 %v582_v42  ;;  %v1898_v42 = vld [vmem:[#allocation2 + $0x150] sm:$0xff] }
  0x4e   : > { %1422 = vmatprep.subr.mxu0 %v581_v43 }
  0x4f   : > { %1423 = vmatpush3.msra.mxu0 %v581_v43  ;;  %v1902_v43 = vld [vmem:[#allocation2 + $0x148] sm:$0xff] }
  0x50   : > { %1424 = vmatprep.subr.mxu0 %v580_v44 }
  0x51   : > { %1425 = vmatpush3.msra.mxu0 %v580_v44  ;;  %v1906_v44 = vld [vmem:[#allocation2 + $0x140] sm:$0xff] }
  0x52   : > { %1426 = vmatprep.subr.mxu0 %v579_v45 }
  0x53   : > { %1427 = vmatpush3.msra.mxu0 %v579_v45  ;;  %v1910_v45 = vld [vmem:[#allocation2 + $0x138] sm:$0xff] }
  0x54   : > { %1428 = vmatprep.subr.mxu0 %v578_v46 }
  0x55   : > { %1429 = vmatpush3.msra.mxu0 %v578_v46  ;;  %v1914_v46 = vld [vmem:[#allocation2 + $0x130] sm:$0xff] }
  0x56   : > { %1430 = vmatprep.subr.mxu0 %v577_v32 }
  0x57   : > { %1431 = vmatpush3.msra.mxu0 %v577_v32 }
  0x58   : > { %1432 = vmatprep.subr.mxu0 %v576_v33 }
  0x59   : > { %1433 = vmatpush3.msra.mxu0 %v576_v33  ;;  %v759_v33 = vld [vmem:[#allocation2 + $0x120] sm:$0xff] }
  0x5a   : > { %1434 = vmatprep.subr.mxu0 %v575_v34 }
  0x5b   : > { %1435 = vmatpush3.msra.mxu0 %v575_v34  ;;  %v758_v34 = vld [vmem:[#allocation2 + $0x118] sm:$0xff] }
  0x5c   : > { %1460 = vmatprep.subr.mxu0 %v772_v35 }
  0xec   : > { %v1326_v48 = vpop.f32.mrf.mxu0 }
  0xed   : > { %v304_v49 = vadd.f32 %v1326_v48, %v1180_v47  ;;  %v1923_v48 = vld [vmem:[#allocation2 + $0x198] ss:$0 sm:$0xff] }
  0xee   : > { %v298_v50 = vpop.f32.mrf.mxu0 }
  0xef   : > { %v299_v51 = vadd.f32 %v1180_v47, %v298_v50  ;;  %v378_v54 = vmax.f32 %v304_v49, 0.0 }
  0xf0   : > { %v1329_v52 = vpop.f32.mrf.mxu0 }
  0xf1   : > { %v377_v53 = vmax.f32 %v299_v51, 0.0  ;;  %v314_v55 = vadd.f32 %v1329_v52, %v1180_v47 }
  0xf2   : > { %v308_v56 = vpop.f32.mrf.mxu0 }
  0xf3   : > { %v309_v57 = vadd.f32 %v1180_v47, %v308_v56  ;;  %1380 = vmatprep.mubr.f32.mxu1 %v377_v53  ;;  %v380_v61 = vmax.f32 %v314_v55, 0.0 }
  0xf4   : > { %v1332_v58 = vpop.f32.mrf.mxu0  ;;  %1381 = vmatmul.mubr.f32.vlgmr.msra.gmra.mxu1 %v378_v54 }
  0xf5   : > { %v379_v59 = vmax.f32 %v309_v57, 0.0  ;;  %v324_v60 = vadd.f32 %v1332_v58, %v1180_v47  ;;  %1532 = vmatpush3.msra.mxu1 %v772_v35 }
  0xf6   : > { %v318_v62 = vpop.f32.mrf.mxu0  ;;  %1517 = vmatprep.subr.mxu1 %v771_v36 }
  0xf7   : > { %v319_v63 = vadd.f32 %v1180_v47, %v318_v62  ;;  %1383 = vmatprep.mubr.f32.mxu1 %v379_v59  ;;  %v382_v0 = vmax.f32 %v324_v60, 0.0  ;;  %1533 = vmatpush3.msra.mxu1 %v771_v36 }
  0xf8   : > { %v1335_v1 = vpop.f32.mrf.mxu0  ;;  %1384 = vmatmul.mubr.f32.gmra.mxu1 %v380_v61  ;;  %1518 = vmatprep.subr.mxu1 %v770_v37 }
  0xf9   : > { %v381_v2 = vmax.f32 %v319_v63, 0.0  ;;  %v334_v3 = vadd.f32 %v1335_v1, %v1180_v47  ;;  %1534 = vmatpush3.msra.mxu1 %v770_v37 }
  0xfa   : > { %v328_v4 = vpop.f32.mrf.mxu0  ;;  %1519 = vmatprep.subr.mxu1 %v1883_v38 }
  0xfb   : > { %v329_v5 = vadd.f32 %v1180_v47, %v328_v4  ;;  %1386 = vmatprep.mubr.f32.mxu1 %v381_v2  ;;  %v384_v6 = vmax.f32 %v334_v3, 0.0  ;;  %1535 = vmatpush3.msra.mxu1 %v1883_v38 }
  0xfc   : > { %v1338_v7 = vpop.f32.mrf.mxu0  ;;  %1387 = vmatmul.mubr.f32.gmra.mxu1 %v382_v0  ;;  %1520 = vmatprep.subr.mxu1 %v1886_v39 }
  0xfd   : > { %v383_v8 = vmax.f32 %v329_v5, 0.0  ;;  %v344_v9 = vadd.f32 %v1338_v7, %v1180_v47  ;;  %1536 = vmatpush3.msra.mxu1 %v1886_v39 }
  0xfe   : > { %v338_v10 = vpop.f32.mrf.mxu0  ;;  %1521 = vmatprep.subr.mxu1 %v1890_v40 }
  0xff   : > { %v339_v11 = vadd.f32 %v1180_v47, %v338_v10  ;;  %1389 = vmatprep.mubr.f32.mxu1 %v383_v8  ;;  %v386_v12 = vmax.f32 %v344_v9, 0.0  ;;  %1537 = vmatpush3.msra.mxu1 %v1890_v40 }
 0x100   : > { %v1341_v13 = vpop.f32.mrf.mxu0  ;;  %1390 = vmatmul.mubr.f32.gmra.mxu1 %v384_v6  ;;  %1522 = vmatprep.subr.mxu1 %v1894_v41 }
 0x101   : > { %v385_v14 = vmax.f32 %v339_v11, 0.0  ;;  %v354_v15 = vadd.f32 %v1341_v13, %v1180_v47  ;;  %1538 = vmatpush3.msra.mxu1 %v1894_v41 }
 0x102   : > { %v348_v16 = vpop.f32.mrf.mxu0  ;;  %1523 = vmatprep.subr.mxu1 %v1898_v42 }
 0x103   : > { %v349_v17 = vadd.f32 %v1180_v47, %v348_v16  ;;  %1392 = vmatprep.mubr.f32.mxu1 %v385_v14  ;;  %v388_v18 = vmax.f32 %v354_v15, 0.0  ;;  %1539 = vmatpush3.msra.mxu1 %v1898_v42 }
 0x104   : > { %v1344_v19 = vpop.f32.mrf.mxu0  ;;  %1393 = vmatmul.mubr.f32.gmra.mxu1 %v386_v12  ;;  %1524 = vmatprep.subr.mxu1 %v1902_v43 }
 0x105   : > { %v387_v20 = vmax.f32 %v349_v17, 0.0  ;;  %v364_v21 = vadd.f32 %v1344_v19, %v1180_v47  ;;  %1540 = vmatpush3.msra.mxu1 %v1902_v43 }
 0x106   : > { %v358_v22 = vpop.f32.mrf.mxu0  ;;  %1525 = vmatprep.subr.mxu1 %v1906_v44 }
 0x107   : > { %v359_v23 = vadd.f32 %v1180_v47, %v358_v22  ;;  %1395 = vmatprep.mubr.f32.mxu1 %v387_v20  ;;  %v390_v24 = vmax.f32 %v364_v21, 0.0  ;;  %1541 = vmatpush3.msra.mxu1 %v1906_v44 }
 0x108   : > { %v1347_v25 = vpop.f32.mrf.mxu0  ;;  %1396 = vmatmul.mubr.f32.gmra.mxu1 %v388_v18  ;;  %1526 = vmatprep.subr.mxu1 %v1910_v45 }
 0x109   : > { %v389_v26 = vmax.f32 %v359_v23, 0.0  ;;  %v374_v27 = vadd.f32 %v1347_v25, %v1180_v47  ;;  %1542 = vmatpush3.msra.mxu1 %v1910_v45 }
 0x10a   : > { %v368_v28 = vpop.f32.mrf.mxu0  ;;  %1527 = vmatprep.subr.mxu1 %v1914_v46 }
 0x10b   : > { %v369_v29 = vadd.f32 %v1180_v47, %v368_v28  ;;  %1398 = vmatprep.mubr.f32.mxu1 %v389_v26  ;;  %v392_v30 = vmax.f32 %v374_v27, 0.0  ;;  %v1918_v47 = vld [vmem:[#allocation2 + $0x128] sm:$0xff]  ;;  %1543 = vmatpush3.msra.mxu1 %v1914_v46 }
 0x10c   : > { %1399 = vmatmul.mubr.f32.gmra.mxu1 %v390_v24  ;;  %1528 = vmatprep.subr.mxu1 %v1918_v47 }
 0x10d   : > { %v391_v31 = vmax.f32 %v369_v29, 0.0  ;;  %1544 = vmatpush3.msra.mxu1 %v1918_v47 }
 0x10e   : > { %1529 = vmatprep.subr.mxu1 %v759_v33 }
 0x10f   : > { %1401 = vmatprep.mubr.f32.mxu1 %v391_v31  ;;  %1545 = vmatpush3.msra.mxu1 %v759_v33 }
 0x110   : > { %1402 = vmatmul.mubr.f32.gmra.mxu1 %v392_v30  ;;  %1530 = vmatprep.subr.mxu1 %v758_v34 }
 0x111   : > { %1546 = vmatpush3.msra.mxu1 %v758_v34 }
 0x1b4   : > { %v1382_v49 = vpop.f32.mrf.mxu1 }
 0x1b5   : > { %v486_v50 = vadd.f32 %v1382_v49, %v1923_v48 }
 0x1b6   : > { %v480_v51 = vpop.f32.mrf.mxu1 }
 0x1b7   : > { %v481_v52 = vadd.f32 %v1923_v48, %v480_v51  ;;  %v560_v55 = vmax.f32 %v486_v50, 0.0 }
 0x1b8   : > { %v1385_v53 = vpop.f32.mrf.mxu1 }
 0x1b9   : > { %v559_v54 = vmax.f32 %v481_v52, 0.0  ;;  %v496_v56 = vadd.f32 %v1385_v53, %v1923_v48 }
 0x1ba   : > { %v490_v57 = vpop.f32.mrf.mxu1 }
 0x1bb   : > { %v491_v58 = vadd.f32 %v1923_v48, %v490_v57  ;;  %1436 = vmatprep.mubr.f32.mxu0 %v559_v54  ;;  %v562_v61 = vmax.f32 %v496_v56, 0.0 }
 0x1bc   : > { %v1388_v59 = vpop.f32.mrf.mxu1  ;;  %1437 = vmatmul.mubr.f32.vlgmr.msra.gmra.mxu0 %v560_v55 }
 0x1bd   : > { %v561_v60 = vmax.f32 %v491_v58, 0.0  ;;  %1461 = vmatpush3.msra.mxu0 %v772_v35  ;;  %v506_v62 = vadd.f32 %v1388_v59, %v1923_v48  ;;  %v757_v35 = vld [vmem:[#allocation2 + $0x110] sm:$0xff] }
 0x1be   : > { %v500_v63 = vpop.f32.mrf.mxu1  ;;  %1462 = vmatprep.subr.mxu0 %v771_v36  ;;  %1531 = vmatprep.subr.mxu1 %v757_v35 }
 0x1bf   : > { %v501_v0 = vadd.f32 %v1923_v48, %v500_v63  ;;  %1439 = vmatprep.mubr.f32.mxu0 %v561_v60  ;;  %1463 = vmatpush3.msra.mxu0 %v771_v36  ;;  %v564_v3 = vmax.f32 %v506_v62, 0.0  ;;  %v1198_v36 = vld [vmem:[#allocation2 + $0x1a0] ss:$0 sm:$0xff] }
 0x1c0   : > { %v1391_v1 = vpop.f32.mrf.mxu1  ;;  %1440 = vmatmul.mubr.f32.gmra.mxu0 %v562_v61  ;;  %1464 = vmatprep.subr.mxu0 %v770_v37 }
 0x1c1   : > { %v563_v2 = vmax.f32 %v501_v0, 0.0  ;;  %1465 = vmatpush3.msra.mxu0 %v770_v37  ;;  %v516_v4 = vadd.f32 %v1391_v1, %v1923_v48  ;;  %1547 = vmatpush3.msra.mxu1 %v757_v35 }
 0x1c2   : > { %v510_v5 = vpop.f32.mrf.mxu1  ;;  %1466 = vmatprep.subr.mxu0 %v1883_v38 }
 0x1c3   : > { %v511_v6 = vadd.f32 %v1923_v48, %v510_v5  ;;  %1442 = vmatprep.mubr.f32.mxu0 %v563_v2  ;;  %1467 = vmatpush3.msra.mxu0 %v1883_v38  ;;  %v566_v9 = vmax.f32 %v516_v4, 0.0 }
 0x1c4   : > { %v1394_v7 = vpop.f32.mrf.mxu1  ;;  %1443 = vmatmul.mubr.f32.gmra.mxu0 %v564_v3  ;;  %1468 = vmatprep.subr.mxu0 %v1886_v39 }
 0x1c5   : > { %v565_v8 = vmax.f32 %v511_v6, 0.0  ;;  %1469 = vmatpush3.msra.mxu0 %v1886_v39  ;;  %v526_v10 = vadd.f32 %v1394_v7, %v1923_v48 }
 0x1c6   : > { %v520_v11 = vpop.f32.mrf.mxu1  ;;  %1470 = vmatprep.subr.mxu0 %v1890_v40 }
 0x1c7   : > { %v521_v12 = vadd.f32 %v1923_v48, %v520_v11  ;;  %1445 = vmatprep.mubr.f32.mxu0 %v565_v8  ;;  %1471 = vmatpush3.msra.mxu0 %v1890_v40  ;;  %v568_v15 = vmax.f32 %v526_v10, 0.0 }
 0x1c8   : > { %v1397_v13 = vpop.f32.mrf.mxu1  ;;  %1446 = vmatmul.mubr.f32.gmra.mxu0 %v566_v9  ;;  %1472 = vmatprep.subr.mxu0 %v1894_v41 }
 0x1c9   : > { %v567_v14 = vmax.f32 %v521_v12, 0.0  ;;  %1473 = vmatpush3.msra.mxu0 %v1894_v41  ;;  %v536_v16 = vadd.f32 %v1397_v13, %v1923_v48 }
 0x1ca   : > { %v530_v17 = vpop.f32.mrf.mxu1  ;;  %1474 = vmatprep.subr.mxu0 %v1898_v42 }
 0x1cb   : > { %v531_v18 = vadd.f32 %v1923_v48, %v530_v17  ;;  %1448 = vmatprep.mubr.f32.mxu0 %v567_v14  ;;  %1475 = vmatpush3.msra.mxu0 %v1898_v42  ;;  %v570_v21 = vmax.f32 %v536_v16, 0.0 }
 0x1cc   : > { %v1400_v19 = vpop.f32.mrf.mxu1  ;;  %1449 = vmatmul.mubr.f32.gmra.mxu0 %v568_v15  ;;  %1476 = vmatprep.subr.mxu0 %v1902_v43 }
 0x1cd   : > { %v569_v20 = vmax.f32 %v531_v18, 0.0  ;;  %1477 = vmatpush3.msra.mxu0 %v1902_v43  ;;  %v546_v22 = vadd.f32 %v1400_v19, %v1923_v48 }
 0x1ce   : > { %v540_v23 = vpop.f32.mrf.mxu1  ;;  %1478 = vmatprep.subr.mxu0 %v1906_v44 }
 0x1cf   : > { %v541_v24 = vadd.f32 %v1923_v48, %v540_v23  ;;  %1451 = vmatprep.mubr.f32.mxu0 %v569_v20  ;;  %1479 = vmatpush3.msra.mxu0 %v1906_v44  ;;  %v572_v27 = vmax.f32 %v546_v22, 0.0 }
 0x1d0   : > { %v1403_v25 = vpop.f32.mrf.mxu1  ;;  %1452 = vmatmul.mubr.f32.gmra.mxu0 %v570_v21  ;;  %1480 = vmatprep.subr.mxu0 %v1910_v45  ;;  %v1199_v21 = vld [vmem:[#allocation2 + $0x1a8] ss:$0 sm:$0xff] }
 0x1d1   : > { %v571_v26 = vmax.f32 %v541_v24, 0.0  ;;  %1481 = vmatpush3.msra.mxu0 %v1910_v45  ;;  %v556_v28 = vadd.f32 %v1403_v25, %v1923_v48 }
 0x1d2   : > { %v550_v29 = vpop.f32.mrf.mxu1  ;;  %1482 = vmatprep.subr.mxu0 %v1914_v46 }
 0x1d3   : > { %v551_v30 = vadd.f32 %v1923_v48, %v550_v29  ;;  %1454 = vmatprep.mubr.f32.mxu0 %v571_v26  ;;  %1483 = vmatpush3.msra.mxu0 %v1914_v46  ;;  %v574_v32 = vmax.f32 %v556_v28, 0.0 }
 0x1d4   : > { %1455 = vmatmul.mubr.f32.gmra.mxu0 %v572_v27  ;;  %1484 = vmatprep.subr.mxu0 %v1918_v47 }
 0x1d5   : > { %v573_v31 = vmax.f32 %v551_v30, 0.0  ;;  %1485 = vmatpush3.msra.mxu0 %v1918_v47 }
 0x1d6   : > { %1486 = vmatprep.subr.mxu0 %v759_v33 }
 0x1d7   : > { %1457 = vmatprep.mubr.f32.mxu0 %v573_v31  ;;  %1487 = vmatpush3.msra.mxu0 %v759_v33 }
 0x1d8   : > { %1458 = vmatmul.mubr.f32.gmra.mxu0 %v574_v32  ;;  %1488 = vmatprep.subr.mxu0 %v758_v34 }
 0x1d9   : > { %1489 = vmatpush3.msra.mxu0 %v758_v34 }
 0x1da   : > { %1490 = vmatprep.subr.mxu0 %v757_v35 }
 0x1db   : > { %1491 = vmatpush3.msra.mxu0 %v757_v35 }
 0x27c   : > { %v1438_v37 = vpop.f32.mrf.mxu0 }
 0x27d   : > { %v668_v38 = vadd.f32 %v1438_v37, %v1198_v36 }
 0x27e   : > { %v662_v39 = vpop.f32.mrf.mxu0 }
 0x27f   : > { %v663_v40 = vadd.f32 %v1198_v36, %v662_v39  ;;  %v742_v43 = vmax.f32 %v668_v38, 0.0 }
 0x280   : > { %v1441_v41 = vpop.f32.mrf.mxu0 }
 0x281   : > { %v741_v42 = vmax.f32 %v663_v40, 0.0  ;;  %v678_v44 = vadd.f32 %v1441_v41, %v1198_v36 }
 0x282   : > { %v672_v45 = vpop.f32.mrf.mxu0 }
 0x283   : > { %v673_v46 = vadd.f32 %v1198_v36, %v672_v45  ;;  %1492 = vmatprep.mubr.f32.mxu0 %v741_v42  ;;  %v744_v49 = vmax.f32 %v678_v44, 0.0 }
 0x284   : > { %v1444_v47 = vpop.f32.mrf.mxu0  ;;  %1493 = vmatmul.mubr.f32.vlgmr.msra.gmra.mxu0 %v742_v43 }
 0x285   : > { %v743_v48 = vmax.f32 %v673_v46, 0.0  ;;  %v688_v50 = vadd.f32 %v1444_v47, %v1198_v36 }
 0x286   : > { %v682_v51 = vpop.f32.mrf.mxu0 }
 0x287   : > { %v683_v52 = vadd.f32 %v1198_v36, %v682_v51  ;;  %1495 = vmatprep.mubr.f32.mxu0 %v743_v48  ;;  %v746_v55 = vmax.f32 %v688_v50, 0.0 }
 0x288   : > { %v1447_v53 = vpop.f32.mrf.mxu0  ;;  %1496 = vmatmul.mubr.f32.gmra.mxu0 %v744_v49 }
 0x289   : > { %v745_v54 = vmax.f32 %v683_v52, 0.0  ;;  %v698_v56 = vadd.f32 %v1447_v53, %v1198_v36 }
 0x28a   : > { %v692_v57 = vpop.f32.mrf.mxu0 }
 0x28b   : > { %v693_v58 = vadd.f32 %v1198_v36, %v692_v57  ;;  %1498 = vmatprep.mubr.f32.mxu0 %v745_v54  ;;  %v748_v61 = vmax.f32 %v698_v56, 0.0 }
 0x28c   : > { %v1450_v59 = vpop.f32.mrf.mxu0  ;;  %1499 = vmatmul.mubr.f32.gmra.mxu0 %v746_v55 }
 0x28d   : > { %v747_v60 = vmax.f32 %v693_v58, 0.0  ;;  %v708_v62 = vadd.f32 %v1450_v59, %v1198_v36 }
 0x28e   : > { %v702_v63 = vpop.f32.mrf.mxu0 }
 0x28f   : > { %v703_v0 = vadd.f32 %v1198_v36, %v702_v63  ;;  %1501 = vmatprep.mubr.f32.mxu1 %v747_v60  ;;  %v750_v3 = vmax.f32 %v708_v62, 0.0 }
 0x290   : > { %v1453_v1 = vpop.f32.mrf.mxu0  ;;  %1502 = vmatmul.mubr.f32.vlgmr.msra.gmra.mxu1 %v748_v61 }
 0x291   : > { %v749_v2 = vmax.f32 %v703_v0, 0.0  ;;  %v718_v4 = vadd.f32 %v1453_v1, %v1198_v36 }
 0x292   : > { %v712_v5 = vpop.f32.mrf.mxu0 }
 0x293   : > { %v713_v6 = vadd.f32 %v1198_v36, %v712_v5  ;;  %1504 = vmatprep.mubr.f32.mxu1 %v749_v2  ;;  %v752_v9 = vmax.f32 %v718_v4, 0.0 }
 0x294   : > { %v1456_v7 = vpop.f32.mrf.mxu0  ;;  %1505 = vmatmul.mubr.f32.gmra.mxu1 %v750_v3 }
 0x295   : > { %v751_v8 = vmax.f32 %v713_v6, 0.0  ;;  %v728_v10 = vadd.f32 %v1456_v7, %v1198_v36 }
 0x296   : > { %v722_v11 = vpop.f32.mrf.mxu0 }
 0x297   : > { %v723_v12 = vadd.f32 %v1198_v36, %v722_v11  ;;  %1507 = vmatprep.mubr.f32.mxu1 %v751_v8  ;;  %v754_v15 = vmax.f32 %v728_v10, 0.0 }
 0x298   : > { %v1459_v13 = vpop.f32.mrf.mxu0  ;;  %1508 = vmatmul.mubr.f32.gmra.mxu1 %v752_v9 }
 0x299   : > { %v753_v14 = vmax.f32 %v723_v12, 0.0  ;;  %v738_v16 = vadd.f32 %v1459_v13, %v1198_v36 }
 0x29a   : > { %v732_v17 = vpop.f32.mrf.mxu0 }
 0x29b   : > { %v733_v18 = vadd.f32 %v1198_v36, %v732_v17  ;;  %1510 = vmatprep.mubr.f32.mxu1 %v753_v14  ;;  %v756_v20 = vmax.f32 %v738_v16, 0.0 }
 0x29c   : > { %1511 = vmatmul.mubr.f32.gmra.mxu1 %v754_v15 }
 0x29d   : > { %v755_v19 = vmax.f32 %v733_v18, 0.0 }
 0x29f   : > { %1513 = vmatprep.mubr.f32.mxu1 %v755_v19 }
 0x2a0   : > { %1514 = vmatmul.mubr.f32.gmra.mxu1 %v756_v20 }
 0x344   : > { %v1494_v22 = vpop.f32.mrf.mxu0 }
 0x345   : > { %v850_v23 = vadd.f32 %v1494_v22, %v1199_v21 }
 0x346   : > { %v844_v24 = vpop.f32.mrf.mxu0 }
 0x347   : > { %925 = vmax.xlane.f32.xlu0 %v850_v23  ;;  %v845_v26 = vadd.f32 %v1199_v21, %v844_v24 }
 0x348   : > { %v1497_v25 = vpop.f32.mrf.mxu0 }
 0x349   : > { %v860_v27 = vadd.f32 %v1497_v25, %v1199_v21 }
 0x34a   : > { %v854_v28 = vpop.f32.mrf.mxu0 }
 0x34b   : > { %929 = vmax.xlane.f32.xlu1 %v860_v27  ;;  %923 = vmax.xlane.f32.xlu0 %v845_v26  ;;  %v855_v30 = vadd.f32 %v1199_v21, %v854_v28 }
 0x34c   : > { %v1500_v29 = vpop.f32.mrf.mxu0 }
 0x34d   : > { %v870_v34 = vadd.f32 %v1500_v29, %v1199_v21 }
 0x34e   : > { %v864_v31 = vpop.f32.mrf.mxu0 }
 0x34f   : > { %v865_v32 = vadd.f32 %v1199_v21, %v864_v31  ;;  %927 = vmax.xlane.f32.xlu1 %v855_v30 }
 0x350   : > { %v1503_v33 = vpop.f32.mrf.mxu1 }
 0x351   : > { %931 = vmax.xlane.f32.xlu0 %v865_v32  ;;  %v880_v38 = vadd.f32 %v1503_v33, %v1199_v21 }
 0x352   : > { %v874_v35 = vpop.f32.mrf.mxu1 }
 0x353   : > { %v875_v36 = vadd.f32 %v1199_v21, %v874_v35  ;;  %933 = vmax.xlane.f32.xlu1 %v870_v34 }
 0x354   : > { %v1506_v37 = vpop.f32.mrf.mxu1 }
 0x355   : > { %935 = vmax.xlane.f32.xlu0 %v875_v36  ;;  %v890_v42 = vadd.f32 %v1506_v37, %v1199_v21 }
 0x356   : > { %v884_v39 = vpop.f32.mrf.mxu1 }
 0x357   : > { %v885_v40 = vadd.f32 %v1199_v21, %v884_v39  ;;  %937 = vmax.xlane.f32.xlu1 %v880_v38 }
 0x358   : > { %v1509_v41 = vpop.f32.mrf.mxu1 }
 0x359   : > { %939 = vmax.xlane.f32.xlu0 %v885_v40  ;;  %v1963_v46 = vadd.f32 %v1509_v41, %v1199_v21 }
 0x35a   : > { %v894_v43 = vpop.f32.mrf.mxu1 }
 0x35b   : > { %v1961_v44 = vadd.f32 %v1199_v21, %v894_v43  ;;  %941 = vmax.xlane.f32.xlu1 %v890_v42 }
 0x35c   : > { %v1512_v45 = vpop.f32.mrf.mxu1 }
 0x35d   : > { %943 = vmax.xlane.f32.xlu0 %v1961_v44  ;;  %v1969_v50 = vadd.f32 %v1512_v45, %v1199_v21 }
 0x35e   : > { %v904_v47 = vpop.f32.mrf.mxu1 }
 0x35f   : > { %v1966_v48 = vadd.f32 %v1199_v21, %v904_v47  ;;  %945 = vmax.xlane.f32.xlu1 %v1963_v46 }
 0x360   : > { %v1515_v49 = vpop.f32.mrf.mxu1 }
 0x361   : > { %947 = vmax.xlane.f32.xlu0 %v1966_v48  ;;  %v1975_v53 = vadd.f32 %v1515_v49, %v1199_v21 }
 0x362   : > { %v914_v51 = vpop.f32.mrf.mxu1 }
 0x363   : > { %v1972_v52 = vadd.f32 %v1199_v21, %v914_v51  ;;  %949 = vmax.xlane.f32.xlu1 %v1969_v50 }
 0x365   : > { %951 = vmax.xlane.f32.xlu0 %v1972_v52 }
 0x367   : > { %953 = vmax.xlane.f32.xlu1 %v1975_v53 }
 0x3d0   : > { %v926_v54 = vpop.xlane.xlu0 %925 }
 0x3d1   : > { %v956_v55 = vsub.f32 %v850_v23, %v926_v54 }
 0x3d3   : > { %v973_v56 = vmul.f32 1.442695, %v956_v55 }
 0x3d4   : > { %v930_v57 = vpop.xlane.xlu1 %929  ;;  %v924_v58 = vpop.xlane.xlu0 %923 }
 0x3d5   : > { %1602 = vpow2.f32 %v973_v56  ;;  %v958_v59 = vsub.f32 %v860_v27, %v930_v57  ;;  %v955_v60 = vsub.f32 %v845_v26, %v924_v58 }
 0x3d7   : > { %v977_v61 = vmul.f32 1.442695, %v958_v59  ;;  %v971_v62 = vmul.f32 1.442695, %v955_v60 }
 0x3d8   : > { %v928_v63 = vpop.xlane.xlu1 %927 }
 0x3d9   : > { %1604 = vpow2.f32 %v977_v61  ;;  %v957_v0 = vsub.f32 %v855_v30, %v928_v63 }
 0x3da   : > { %1606 = vpow2.f32 %v971_v62  ;;  %v932_v1 = vpop.xlane.xlu0 %931 }
 0x3db   : > { %v975_v2 = vmul.f32 1.442695, %v957_v0  ;;  %v959_v3 = vsub.f32 %v865_v32, %v932_v1 }
 0x3dc   : > { %v934_v4 = vpop.xlane.xlu1 %933 }
 0x3dd   : > { %1608 = vpow2.f32 %v975_v2  ;;  %v960_v5 = vsub.f32 %v870_v34, %v934_v4  ;;  %v979_v6 = vmul.f32 1.442695, %v959_v3 }
 0x3de   : > { %v936_v7 = vpop.xlane.xlu0 %935 }
 0x3df   : > { %v981_v8 = vmul.f32 1.442695, %v960_v5  ;;  %v961_v9 = vsub.f32 %v875_v36, %v936_v7 }
 0x3e0   : > { %v938_v10 = vpop.xlane.xlu1 %937 }
 0x3e1   : > { %1610 = vpow2.f32 %v981_v8  ;;  %v962_v11 = vsub.f32 %v880_v38, %v938_v10  ;;  %v983_v13 = vmul.f32 1.442695, %v961_v9 }
 0x3e2   : > { %v1979_v12 = vpop.eup %1602  ;;  %1612 = vpow2.f32 %v979_v6  ;;  %v940_v14 = vpop.xlane.xlu0 %939 }
 0x3e3   : > { %v985_v15 = vmul.f32 1.442695, %v962_v11  ;;  %v963_v16 = vsub.f32 %v885_v40, %v940_v14  ;;  %1005 = vadd.xlane.f32.xlu1 %v1979_v12 }
 0x3e4   : > { %v942_v17 = vpop.xlane.xlu1 %941 }
 0x3e5   : > { %1614 = vpow2.f32 %v985_v15  ;;  %v964_v18 = vsub.f32 %v890_v42, %v942_v17  ;;  %v987_v20 = vmul.f32 1.442695, %v963_v16 }
 0x3e6   : > { %v1982_v19 = vpop.eup %1604  ;;  %1616 = vpow2.f32 %v983_v13  ;;  %v944_v21 = vpop.xlane.xlu0 %943 }
 0x3e7   : > { %v1984_v22 = vpop.eup %1606  ;;  %v989_v23 = vmul.f32 1.442695, %v964_v18  ;;  %v965_v24 = vsub.f32 %v1961_v44, %v944_v21  ;;  %1009 = vadd.xlane.f32.xlu1 %v1982_v19 }
 0x3e8   : > { %1003 = vadd.xlane.f32.xlu0 %v1984_v22  ;;  %v946_v25 = vpop.xlane.xlu1 %945 }
 0x3e9   : > { %1618 = vpow2.f32 %v989_v23  ;;  %v966_v26 = vsub.f32 %v1963_v46, %v946_v25  ;;  %v991_v28 = vmul.f32 1.442695, %v965_v24 }
 0x3ea   : > { %v1990_v27 = vpop.eup %1608  ;;  %1620 = vpow2.f32 %v987_v20  ;;  %v948_v29 = vpop.xlane.xlu0 %947 }
 0x3eb   : > { %v993_v30 = vmul.f32 1.442695, %v966_v26  ;;  %v967_v31 = vsub.f32 %v1966_v48, %v948_v29 }
 0x3ec   : > { %1007 = vadd.xlane.f32.xlu0 %v1990_v27  ;;  %v950_v32 = vpop.xlane.xlu1 %949 }
 0x3ed   : > { %1622 = vpow2.f32 %v993_v30  ;;  %v968_v33 = vsub.f32 %v1969_v50, %v950_v32  ;;  %v995_v35 = vmul.f32 1.442695, %v967_v31 }
 0x3ee   : > { %v1995_v34 = vpop.eup %1610  ;;  %1624 = vpow2.f32 %v991_v28  ;;  %v952_v36 = vpop.xlane.xlu0 %951 }
 0x3ef   : > { %v1997_v37 = vpop.eup %1612  ;;  %v997_v38 = vmul.f32 1.442695, %v968_v33  ;;  %v969_v39 = vsub.f32 %v1972_v52, %v952_v36  ;;  %1013 = vadd.xlane.f32.xlu1 %v1995_v34 }
 0x3f0   : > { %1011 = vadd.xlane.f32.xlu0 %v1997_v37  ;;  %v954_v40 = vpop.xlane.xlu1 %953 }
 0x3f1   : > { %1626 = vpow2.f32 %v997_v38  ;;  %v970_v41 = vsub.f32 %v1975_v53, %v954_v40  ;;  %v999_v43 = vmul.f32 1.442695, %v969_v39 }
 0x3f2   : > { %v2003_v42 = vpop.eup %1614  ;;  %1628 = vpow2.f32 %v995_v35 }
 0x3f3   : > { %v2005_v44 = vpop.eup %1616  ;;  %v1001_v45 = vmul.f32 1.442695, %v970_v41  ;;  %1017 = vadd.xlane.f32.xlu1 %v2003_v42 }
 0x3f4   : > { %1015 = vadd.xlane.f32.xlu0 %v2005_v44 }
 0x3f5   : > { %1630 = vpow2.f32 %v1001_v45 }
 0x3f6   : > { %v2009_v46 = vpop.eup %1618  ;;  %1632 = vpow2.f32 %v999_v43 }
 0x3f7   : > { %v2011_v47 = vpop.eup %1620  ;;  %1021 = vadd.xlane.f32.xlu1 %v2009_v46 }
 0x3f8   : > { %1019 = vadd.xlane.f32.xlu0 %v2011_v47 }
 0x3fa   : > { %v2015_v48 = vpop.eup %1622 }
 0x3fb   : > { %v2017_v49 = vpop.eup %1624  ;;  %1025 = vadd.xlane.f32.xlu1 %v2015_v48 }
 0x3fc   : > { %1023 = vadd.xlane.f32.xlu0 %v2017_v49 }
 0x3fe   : > { %v2021_v50 = vpop.eup %1626 }
 0x3ff   : > { %v2023_v51 = vpop.eup %1628  ;;  %1029 = vadd.xlane.f32.xlu1 %v2021_v50 }
 0x400   : > { %1027 = vadd.xlane.f32.xlu0 %v2023_v51 }
 0x402   : > { %v2027_v52 = vpop.eup %1630 }
 0x403   : > { %v2029_v53 = vpop.eup %1632  ;;  %1033 = vadd.xlane.f32.xlu1 %v2027_v52 }
 0x404   : > { %1031 = vadd.xlane.f32.xlu0 %v2029_v53 }
 0x46c   : > { %v1006_v54 = vpop.xlane.xlu1 %1005 }
 0x46d   : > { %1634 = vrcp.f32 %v1006_v54 }
 0x470   : > { %v1010_v55 = vpop.xlane.xlu1 %1009 }
 0x471   : > { %1636 = vrcp.f32 %v1010_v55  ;;  %v1004_v56 = vpop.xlane.xlu0 %1003 }
 0x472   : > { %1638 = vrcp.f32 %v1004_v56 }
 0x475   : > { %v1008_v57 = vpop.xlane.xlu0 %1007 }
 0x476   : > { %1640 = vrcp.f32 %v1008_v57 }
 0x478   : > { %v1014_v58 = vpop.xlane.xlu1 %1013 }
 0x479   : > { %1642 = vrcp.f32 %v1014_v58  ;;  %v1012_v59 = vpop.xlane.xlu0 %1011 }
 0x47a   : > { %v1635_v60 = vpop.eup %1634  ;;  %1644 = vrcp.f32 %v1012_v59 }
 0x47b   : > { %v1038_v61 = vmul.f32 %v1635_v60, %v1979_v12 }
 0x47c   : > { %v1018_v62 = vpop.xlane.xlu1 %1017 }
 0x47d   : > { %1068 = vst [vmem:[%s2037_s8 + $0x8] sm:$0xff] %v1038_v61  ;;  %1646 = vrcp.f32 %v1018_v62  ;;  %v1016_v63 = vpop.xlane.xlu0 %1015 }
 0x47e   : > { %v1637_v0 = vpop.eup %1636  ;;  %1648 = vrcp.f32 %v1016_v63 }
 0x47f   : > { %v1639_v1 = vpop.eup %1638  ;;  %v1042_v2 = vmul.f32 %v1637_v0, %v1982_v19 }
 0x480   : > { %v1036_v3 = vmul.f32 %v1639_v1, %v1984_v22  ;;  %v1022_v4 = vpop.xlane.xlu1 %1021 }
 0x481   : > { %1070 = vst [vmem:[%s2037_s8 + $0x18] sm:$0xff] %v1042_v2  ;;  %1650 = vrcp.f32 %v1022_v4  ;;  %v1020_v5 = vpop.xlane.xlu0 %1019 }
 0x482   : > { %1067 = vst [vmem:[%s2037_s8] sm:$0xff] %v1036_v3  ;;  %1652 = vrcp.f32 %v1020_v5 }
 0x483   : > { %v1641_v6 = vpop.eup %1640 }
 0x484   : > { %v1040_v7 = vmul.f32 %v1641_v6, %v1990_v27  ;;  %v1026_v8 = vpop.xlane.xlu1 %1025 }
 0x485   : > { %1654 = vrcp.f32 %v1026_v8  ;;  %v1024_v9 = vpop.xlane.xlu0 %1023 }
 0x486   : > { %v1643_v10 = vpop.eup %1642  ;;  %1069 = vst [vmem:[%s2037_s8 + $0x10] sm:$0xff] %v1040_v7  ;;  %1656 = vrcp.f32 %v1024_v9 }
 0x487   : > { %v1645_v11 = vpop.eup %1644  ;;  %v1046_v12 = vmul.f32 %v1643_v10, %v1995_v34 }
 0x488   : > { %v1044_v13 = vmul.f32 %v1645_v11, %v1997_v37  ;;  %v1030_v14 = vpop.xlane.xlu1 %1029 }
 0x489   : > { %1072 = vst [vmem:[%s2037_s8 + $0x28] sm:$0xff] %v1046_v12  ;;  %1658 = vrcp.f32 %v1030_v14  ;;  %v1028_v15 = vpop.xlane.xlu0 %1027 }
 0x48a   : > { %v1647_v16 = vpop.eup %1646  ;;  %1071 = vst [vmem:[%s2037_s8 + $0x20] sm:$0xff] %v1044_v13  ;;  %1660 = vrcp.f32 %v1028_v15 }
 0x48b   : > { %v1649_v17 = vpop.eup %1648  ;;  %v1050_v18 = vmul.f32 %v1647_v16, %v2003_v42 }
 0x48c   : > { %v1048_v19 = vmul.f32 %v1649_v17, %v2005_v44  ;;  %v1034_v20 = vpop.xlane.xlu1 %1033 }
 0x48d   : > { %1074 = vst [vmem:[%s2037_s8 + $0x38] sm:$0xff] %v1050_v18  ;;  %1662 = vrcp.f32 %v1034_v20  ;;  %v1032_v21 = vpop.xlane.xlu0 %1031 }
 0x48e   : > { %v1651_v22 = vpop.eup %1650  ;;  %1073 = vst [vmem:[%s2037_s8 + $0x30] sm:$0xff] %v1048_v19  ;;  %1664 = vrcp.f32 %v1032_v21 }
 0x48f   : > { %v1653_v23 = vpop.eup %1652  ;;  %v1054_v24 = vmul.f32 %v1651_v22, %v2009_v46 }
 0x490   : > { %v1052_v25 = vmul.f32 %v1653_v23, %v2011_v47 }
 0x491   : > { %1076 = vst [vmem:[%s2037_s8 + $0x48] sm:$0xff] %v1054_v24 }
 0x492   : > { %v1655_v26 = vpop.eup %1654  ;;  %1075 = vst [vmem:[%s2037_s8 + $0x40] sm:$0xff] %v1052_v25 }
 0x493   : > { %v1657_v27 = vpop.eup %1656  ;;  %v1058_v28 = vmul.f32 %v1655_v26, %v2015_v48 }
 0x494   : > { %v1056_v29 = vmul.f32 %v1657_v27, %v2017_v49 }
 0x495   : > { %1078 = vst [vmem:[%s2037_s8 + $0x58] sm:$0xff] %v1058_v28 }
 0x496   : > { %v1659_v30 = vpop.eup %1658  ;;  %1077 = vst [vmem:[%s2037_s8 + $0x50] sm:$0xff] %v1056_v29 }
 0x497   : > { %v1661_v31 = vpop.eup %1660  ;;  %v1062_v32 = vmul.f32 %v1659_v30, %v2021_v50 }
 0x498   : > { %v1060_v33 = vmul.f32 %v1661_v31, %v2023_v51 }
 0x499   : > { %1080 = vst [vmem:[%s2037_s8 + $0x68] sm:$0xff] %v1062_v32 }
 0x49a   : > { %v1663_v34 = vpop.eup %1662  ;;  %1079 = vst [vmem:[%s2037_s8 + $0x60] sm:$0xff] %v1060_v33 }
 0x49b   : > { %v1665_v35 = vpop.eup %1664  ;;  %v1066_v36 = vmul.f32 %v1663_v34, %v2027_v52 }
 0x49c   : > { %v1064_v37 = vmul.f32 %v1665_v35, %v2029_v53 }
 0x49d   : > { %1082 = vst [vmem:[%s2037_s8 + $0x78] sm:$0xff] %v1066_v36 }
 0x49e   : > { %1081 = vst [vmem:[%s2037_s8 + $0x70] sm:$0xff] %v1064_v37 }
 0x49f   : > { %1705 = shalt.err (!%p1702_p0)
}
 0x4a0   : > { %s1706_s27 = scalar_lea.hbm %s2072_s22, 2048  ;;  %s1710_s30 = scalar_lea.hbm %s2123_s2, 4096 }
 0x4a1   : > { %p1707_p1 = scmp.ne.s32.totalorder %s2072_s22, %s1706_s27  ;;  %p1711_p4 = scmp.lt.s32.totalorder %s2072_s22, %s2123_s2 }
 0x4a2   : > { %p1712_p7 = scmp.lt.s32.totalorder %s1710_s30, %s1706_s27 }
 0x4a3   : > { %p1708_p2 = pnand %p1707_p1, %p1817_p5 }
 0x4a4   : > { %p1713_p8 = por %p1712_p7, %p1711_p4 }
 0x4a5   : > { %p1709_p3 = pneg %p1708_p2 }
 0x4a7   : > { %p1714_p6 = pnand %p1713_p8, %p1709_p3 }
 0x4a9   : > { %1717 = shalt.err (!%p1714_p6)
}
 0x4aa   : > { %s1762_s5 = smov 128   ;;  %s1763_s6 = smov 8  }
 0x4ab   : > { %1552 = dma.vmem_to_hbm [thread:$0]  (%p1817_p5), %s2074_s16, 2048, %s2072_s22, %s2081_s13, %s1762_s5, %s1762_s5, %s1763_s6  }
 0x4ac PF: > { %p1564_p9 = scmp.ge.s32.totalorder %s1756_s12, 2  ;;  %s1112_s7 = sand.u32 1, %s1744_s9  }
 0x4ad   : > { %p2127_p10 = scmp.ne.s32.totalorder %s2125_s20, 0  ;;  %s1113_s8 = scalar_lea.sflag [#allocation4], %s1112_s7 }
 0x4af   : > { %p1559_p11 = pnand %p1564_p9, %p2127_p10 }
 0x4b1   : > { %p1560_p12 = pneg %p1559_p11 }
 0x4b3   : > { %1739 = dma.done.wait (%p1560_p12), %s1113_s8, 2048  }
 0x4b4   : > { %1741 = vsyncadd (%p1560_p12), %s1113_s8, 4294965248  ;;  %p13_p13 = scmp.ge.s32.totalorder %s1804_s15, 4   ;;  %s2128_s9 = smov %s1748_s10 }
 0x4b5   : > { %s2129_s10 = smov %s1752_s11  ;;  %s2130_s11 = smov %s1815_s18 }
 0x4b6   : > { %s2131_s12 = smov %s1804_s15  ;;  %15 = sbr.rel (!%p13_p13) target bundleno = 4 (0x4), region = 68 }
 0x4bb   :  { %1118 = vsyncpa [#allocation3], 1 }
 0x4bc   :  { %1120 = vsyncpa [#allocation3 + $0x1], 1 }
 0x4bd   :  { %1121 = vsyncpa [#allocation4], 1 }
 0x4be   :  { %1123 = vsyncpa [#allocation4 + $0x1], 1 }

</bundles_post_ra>
